<compile_context>
chip_gen: v7x
topology: tpu7x:2x2x1
jax: 0.10.0
libtpu: 0.0.40
codegen_flags: <defaults>
</compile_context>

<pallas_src>
import math

import numpy as np
import jax
import jax.numpy as jnp
from jax.experimental import pallas as pl
from jax.experimental.pallas import tpu as pltpu


def _dirac_kernel(src_ref, z_ref):
    # src_ref: (TB, 1, WC)  per-batch pattern chunk (resident across the row axis)
    # z_ref  : (TB, TR, WC) output tile: every row of every batch == its pattern chunk
    z_ref[...] = jnp.broadcast_to(src_ref[...], z_ref.shape)


def _pick_tile(total, target, quantum):
    """Largest multiple of `quantum` <= max(target, quantum), preferring one that
    divides `total` (avoids a ragged, masked trailing tile). `total` itself is
    returned when it already fits (a full-extent block is always legal)."""
    total = int(total)
    target = int(max(quantum, (max(int(target), quantum) // quantum) * quantum))
    if total <= target:
        return total
    k = target // quantum
    for _ in range(min(k, 4096)):          # bounded search; a ragged tail is still correct
        cand = k * quantum
        if total % cand == 0:
            return cand
        k -= 1
    return target


def _default_tile_bytes():
    tile_bytes = 4 * 1024 * 1024
    try:
        if "v7" in jax.devices()[0].device_kind.lower():
            tile_bytes = 8 * 1024 * 1024   # v7x: keep the writeback DMA dominant at 3.2 TB/s
    except Exception:
        pass
    return tile_bytes


def dirac_forward(x, num_samples=1, *, tile_bytes=None):
    """
    x:           (B, d) array
    num_samples: S
    returns (z, log_p) with z: (B, S, d) == repeat of x along a new axis,
    log_p: (B, S) zeros (float32).
    """
    B, d = x.shape
    S = int(num_samples)
    dtype = x.dtype
    itemsize = np.dtype(dtype).itemsize
    L = S * d

    if tile_bytes is None:
        tile_bytes = _default_tile_bytes()

    # log_p lives entirely in the wrapper: exact zeros at roofline, and it frees
    # the kernel grid to be fully "parallel".
    log_p = jnp.zeros((B, S), jnp.float32)

    if B == 0 or S == 0 or d == 0:
        return jnp.zeros((B, S, d), dtype), log_p

    # ---- pattern-row selection (lane-dense whenever possible) -----------------
    g = math.gcd(d, 128)
    if S % (128 // g) == 0:
        W = (d * 128) // g                 # lcm(d, 128): lane-dense pattern row
        reps_x = W // d                    # copies of x per pattern row
        R = L // W                         # output rows per batch; every row == pattern row
        src = x if reps_x == 1 else jnp.tile(x, (1, reps_x))   # tiny wrapper op
    else:
        # Generic fallback: pattern row is x itself (lane-padded if d < 128,
        # lane-chunked below if d is huge).
        W, R = d, S
        src = x
    src3 = src.reshape(B, 1, W)

    sp = max(8, 32 // max(1, itemsize))    # sublane pack: 8 f32, 16 bf16, 32 int8/fp8

    # ---- lane chunking: split a too-wide pattern row into 128-aligned chunks --
    max_row_bytes = max(128 * itemsize, tile_bytes // sp)
    WC = _pick_tile(W, max_row_bytes // itemsize, 128)
    nc = pl.cdiv(W, WC)

    # ---- batch / row tiling ----------------------------------------------------
    chunk_col_bytes = R * WC * itemsize    # one batch, one lane-chunk column
    if chunk_col_bytes <= tile_bytes:
        # Whole per-batch slab per step; tile over batch to amortize step overhead.
        TR, nj = R, 1
        TB = _pick_tile(B, tile_bytes // max(1, chunk_col_bytes), 1)
    else:
        TB = 1
        TR = _pick_tile(R, tile_bytes // max(1, WC * itemsize), sp)
        nj = pl.cdiv(R, TR)
    nb = pl.cdiv(B, TB)

    bytes_accessed = B * W * itemsize + B * R * W * itemsize

    z_flat = pl.pallas_call(
        _dirac_kernel,
        out_shape=jax.ShapeDtypeStruct((B, R, W), dtype),
        grid=(nb, nj, nc),
        in_specs=[
            # Pattern chunk: independent of the row-tile axis (resident / refetched cheaply).
            pl.BlockSpec((TB, 1, WC), lambda i, j, c: (i, 0, c)),
        ],
        out_specs=pl.BlockSpec((TB, TR, WC), lambda i, j, c: (i, j, c)),
        compiler_params=pltpu.CompilerParams(
            # No resident output blocks -> every axis is shardable (v7x dual-TC).
            dimension_semantics=("parallel", "parallel", "parallel"),
            vmem_limit_bytes=32 * 1024 * 1024,
        ),
        cost_estimate=pl.CostEstimate(
            flops=0, transcendentals=0, bytes_accessed=bytes_accessed),
    )(src3)

    z = z_flat.reshape(B, S, d)            # free row-major contiguous reshape
    return z, log_p


if __name__ == "__main__":
    key = jax.random.PRNGKey(0)

    # Dirac.forward(x, num_samples): x is (batch, d); demo batch=2, d=32, S=8.
    B, d, S = 2, 32, 8
    x = jax.random.normal(key, (B, d), dtype=jnp.float32)
    z, log_p = dirac_forward(x, num_samples=S)
    jax.block_until_ready((z, log_p))
    assert z.shape == (B, S, d) and log_p.shape == (B, S)
    assert jnp.array_equal(z, jnp.repeat(x[:, None, :], S, axis=1))
    assert jnp.array_equal(log_p, jnp.zeros((B, S), jnp.float32))

    # Lane-dense lcm path for d not a divisor/multiple of 128 (d=48 -> W=384), bf16.
    x2 = jax.random.normal(key, (2, 48), dtype=jnp.float32).astype(jnp.bfloat16)
    z2, lp2 = dirac_forward(x2, num_samples=8)
    jax.block_until_ready((z2, lp2))
    assert jnp.array_equal(z2, jnp.repeat(x2[:, None, :], 8, axis=1))
    assert jnp.array_equal(lp2, jnp.zeros((2, 8), jnp.float32))

    # Generic (non-lane-dense) fallback: d=5, S=3.
    x3 = jax.random.normal(key, (2, 5), dtype=jnp.float32)
    z3, lp3 = dirac_forward(x3, num_samples=3)
    jax.block_until_ready((z3, lp3))
    assert jnp.array_equal(z3, jnp.repeat(x3[:, None, :], 3, axis=1))
    assert jnp.array_equal(lp3, jnp.zeros((2, 3), jnp.float32))

    # Forced tiny tile_bytes to exercise the lane-chunk (nc>1) and row-tile (nj>1) paths.
    x4 = jax.random.normal(key, (2, 1024), dtype=jnp.float32)
    z4, lp4 = dirac_forward(x4, num_samples=16, tile_bytes=16 * 1024)
    jax.block_until_ready((z4, lp4))
    assert jnp.array_equal(z4, jnp.repeat(x4[:, None, :], 16, axis=1))
    assert jnp.array_equal(lp4, jnp.zeros((2, 16), jnp.float32))

    print("KERNEL_OK")
</pallas_src>

<mosaic_0001>
module attributes {stable_mosaic.version = 11 : i64} {
  func.func @_dirac_kernel(%arg0: i32, %arg1: i32, %arg2: i32, %arg3: memref<2x1x128xf32, #tpu.memory_space<vmem>>, %arg4: memref<2x2x128xf32, #tpu.memory_space<vmem>>) attributes {dimension_semantics = [#tpu.dimension_semantics<parallel>, #tpu.dimension_semantics<parallel>, #tpu.dimension_semantics<parallel>], iteration_bounds = array<i64: 1, 1, 1>, scalar_prefetch = 0 : i64, scratch_operands = 0 : i64, tpu.core_type = #tpu.core_type<tc>, window_params = [{transform_indices = @transform_0, window_bounds = array<i64: 2, 1, 128>}, {transform_indices = @transform_1, window_bounds = array<i64: 2, 2, 128>}]} {
    %c0 = arith.constant 0 : index
    %c0_0 = arith.constant 0 : index
    %c0_1 = arith.constant 0 : index
    %0 = vector.load %arg3[%c0, %c0_0, %c0_1] : memref<2x1x128xf32, #tpu.memory_space<vmem>>, vector<2x1x128xf32>
    %1 = vector.shape_cast %0 : vector<2x1x128xf32> to vector<2x1x128xf32>
    %2 = vector.broadcast %1 : vector<2x1x128xf32> to vector<2x2x128xf32>
    %c0_2 = arith.constant 0 : index
    %c0_3 = arith.constant 0 : index
    %c0_4 = arith.constant 0 : index
    %3 = vector.load %arg4[%c0_2, %c0_3, %c0_4] : memref<2x2x128xf32, #tpu.memory_space<vmem>>, vector<2x2x128xf32>
    tpu.vector_store %arg4[%c0_2, %c0_3, %c0_4], %2 {strides = array<i32>} : memref<2x2x128xf32, #tpu.memory_space<vmem>>, vector<2x2x128xf32>,
    return
  }
  func.func @transform_0(%arg0: i32, %arg1: i32, %arg2: i32) -> (i32, i32, i32) {
    %c0_i32 = arith.constant 0 : i32
    %c0_i32_0 = arith.constant 0 : i32
    return %arg0, %c0_i32, %arg2 : i32, i32, i32
  }
  func.func @transform_1(%arg0: i32, %arg1: i32, %arg2: i32) -> (i32, i32, i32) {
    %c0_i32 = arith.constant 0 : i32
    return %arg0, %arg1, %arg2 : i32, i32, i32
  }
}

</mosaic_0001>

<bundles_post_ra>
// kernel: tpu_custom_call.1
= control target key start
LH: loop header
LB: loop body
LE: loop exit
PB: predicated region body
PF: predicated region fallthrough
CT: control target
= control target key end

     0   :  { %6 = vsyncpa [#allocation3], 0  ;;  %s152_s0 = inlined_call_operand.hbm [shape: f32[2,1,128], index: 0, kind: input, shape index: {}]   ;;  %s153_s1 = inlined_call_operand.hbm [shape: f32[2,2,128], index: 1, kind: output, shape index: {}]  }
   0x1   :  { %7 = vsyncpa [#allocation4], 0  ;;  %s112_s6 = smov [#allocation2]   ;;  %s64_s10 = scalar_lea.hbm %s152_s0, 32 }
   0x2   :  { %s13_s7 = sshll.u32 %s112_s6, 4  ;;  %p65_p0 = scmp.ne.s32.totalorder %s152_s0, %s64_s10  ;;  %s14_s7 = int_to_ptr.vmem [resolvable:$true] %s13_s7 }
   0x3   :  { %p68_p1 = scmp.lt.u32.totalorder %s64_s10, %s152_s0 }
   0x5   :  { %p70_p2 = pnand %p68_p1, %p65_p0 }
   0x7   :  { %73 = shalt.err (!%p70_p2)
}
   0x8   :  { %s74_s15 = scalar_lea.vmem %s14_s7, 32  ;;  %p79_p4 = scmp.lt.s32.totalorder %s14_s7, %s14_s7 }
   0x9   :  { %p75_p3 = scmp.ne.s32.totalorder %s14_s7, %s74_s15  ;;  %p80_p5 = scmp.lt.s32.totalorder %s74_s15, %s74_s15 }
   0xb   :  { %p81_p6 = por %p80_p5, %p79_p4 }
   0xd   :  { %p82_p7 = pnand %p81_p6, %p75_p3 }
   0xf   :  { %85 = shalt.err (!%p82_p7)
}
  0x10   :  { %s113_s16 = smov 16   ;;  %s114_s17 = smov 1  }
  0x11   :  { %19 = dma.hbm_to_vmem [thread:$0]  %s152_s0, 32, %s14_s7, [#allocation3], %s113_s16, %s113_s16, %s114_s17  }
  0x12   :  { %108 = dma.done.wait [#allocation3], 32  }
  0x13   :  { %109 = vsyncadd [#allocation3], 4294967264  ;;  %s115_s20 = smov [#allocation5]   ;;  %v56_v0 = vld [vmem:[#allocation2] ss:$0 sm:$0xff] }
  0x14   :  { %s44_s21 = sshll.u32 %s115_s20, 4  ;;  %v57_v1 = vld [vmem:[#allocation2 + $0x1] ss:$0 sm:$0xff]  ;;  %37 = vst [vmem:[#allocation5] sm:$0x3] %v56_v0  ;;  %s45_s21 = int_to_ptr.vmem [resolvable:$true] %s44_s21 }
  0x15   :  { %38 = vst [vmem:[#allocation5 + $0x2] sm:$0x3] %v57_v1  ;;  %s86_s22 = scalar_lea.vmem %s45_s21, 64  ;;  %p91_p9 = scmp.lt.s32.totalorder %s45_s21, %s45_s21 }
  0x16   :  { %p87_p8 = scmp.ne.s32.totalorder %s45_s21, %s86_s22  ;;  %p92_p10 = scmp.lt.s32.totalorder %s86_s22, %s86_s22 }
  0x18   :  { %p93_p11 = por %p92_p10, %p91_p9 }
  0x1a   :  { %p94_p12 = pnand %p93_p11, %p87_p8 }
  0x1c   :  { %97 = shalt.err (!%p94_p12)
}
  0x1d   :  { %s98_s0 = scalar_lea.hbm %s153_s1, 64 }
  0x1e   :  { %p99_p13 = scmp.ne.s32.totalorder %s153_s1, %s98_s0  ;;  %p102_p0 = scmp.lt.u32.totalorder %s98_s0, %s153_s1 }
  0x20   :  { %p104_p1 = pnand %p102_p0, %p99_p13 }
  0x22   :  { %107 = shalt.err (!%p104_p1)
}
  0x23   :  { %s116_s29 = smov 32   ;;  %s117_s30 = smov 2  }
  0x24   :  { %50 = dma.vmem_to_hbm [thread:$0]  %s45_s21, 64, %s153_s1, [#allocation4], %s116_s29, %s116_s29, %s117_s30  }
  0x25   :  { %110 = dma.done.wait [#allocation4], 64  }
  0x26   :  { %111 = vsyncadd [#allocation4], 4294967232 }
  0x27   :  { %54 = vsyncpa [#allocation3], 1 }
  0x28   :  { %55 = vsyncpa [#allocation4], 1 }

</bundles_post_ra>
